<compile_context>
chip_gen: v6e
topology: v6e:2x2x1
jax: 0.10.0
libtpu: 0.0.40
codegen_flags: <defaults>
</compile_context>

<pallas_src>
import jax
import jax.numpy as jnp
from jax.experimental import pallas as pl
from jax.experimental.pallas import tpu as pltpu


def _cdiv(a, b):
    return (a + b - 1) // b


def _round_up(a, b):
    return _cdiv(a, b) * b


def _packed_nll_kernel(pred_ref, tgt_ref, o_ref):
    """Small-C path: each 128-lane row packs k = 128 // c_pad original rows.

    tgt_ref holds, per lane, the flat lane index of that sub-row's label
    (or -1 for padding, which never matches the lane iota).
    """
    p = pred_ref[...]                                           # (br, 128) input dtype
    t = tgt_ref[...]                                            # (br, 128) int32
    lanes = jax.lax.broadcasted_iota(jnp.int32, p.shape, 1)
    picked = jnp.where(lanes == t, p, jnp.zeros((), p.dtype))   # select in input dtype
    row_sum = jnp.sum(picked, axis=1, keepdims=True)            # (br, 1) lane reduce
    partial = jnp.sum(row_sum.astype(jnp.float32), axis=0, keepdims=True)
    # Lane-dense 128-wide output slab; -1/N scaling happens in the wrapper.
    o_ref[...] = jnp.broadcast_to(partial, (1, 128))


def _general_nll_kernel(pred_ref, lab_ref, o_ref):
    """General path (C > 128): stream full (br, C) tiles; one-hot lane select."""
    p = pred_ref[...]                                           # (br, C) input dtype
    l = lab_ref[...]                                            # (br, 1) int32
    cols = jax.lax.broadcasted_iota(jnp.int32, p.shape, 1)
    picked = jnp.where(cols == l, p, jnp.zeros((), p.dtype))
    row_sum = jnp.sum(picked, axis=1, keepdims=True)            # (br, 1)
    partial = jnp.sum(row_sum.astype(jnp.float32), axis=0, keepdims=True)
    o_ref[...] = jnp.broadcast_to(partial, (1, 128))


def nll_loss(pred, label, *, target_step_bytes=8 * 1024 * 1024, force_pallas=False):
    """Pallas TPU implementation of F.nll_loss(pred, label), reduction='mean'."""
    # TODO(synk): torch's ignore_index=-100 divisor adjustment is not
    # implemented; all labels are assumed to be valid class indices.

    # Flatten any trailing spatial dims: [N, C, *S] -> [N*prod(S), C].
    if pred.ndim > 2:
        perm = (0,) + tuple(range(2, pred.ndim)) + (1,)
        pred2 = jnp.transpose(pred, perm).reshape(-1, pred.shape[1])
    else:
        pred2 = pred.reshape(-1, pred.shape[-1])
    lab = label.reshape(-1).astype(jnp.int32)

    rows, c = pred2.shape
    itemsize = pred2.dtype.itemsize
    c_lanes = _round_up(c, 128)          # lane-padded class count (VMEM/HBM tiling)
    scale = -1.0 / float(rows)           # python float -> compile-time immediate

    # ---- Tiny-input fast path: kernel launch overhead would dominate. ----
    if not force_pallas and rows * c_lanes * itemsize < 256 * 1024:
        picked = jnp.take_along_axis(pred2, lab[:, None], axis=1)
        return (scale * jnp.sum(picked.astype(jnp.float32))).astype(pred.dtype)

    # Sublane granularity for the pred dtype (second-minor tiling).
    sub = {1: 32, 2: 16}.get(itemsize, 8)

    if c <= 128:
        # ---- Small-C path: pack k rows densely into one 128-lane row. ----
        c_pad = 1
        while c_pad < c:
            c_pad *= 2                    # power of two <= 128, divides 128
        k = 128 // c_pad

        n_packed = _cdiv(rows, k)

        # Lane-padding-aware sizing: pred (128 lanes) + int32 targets (128 lanes).
        bytes_per_prow = 128 * itemsize + 128 * 4
        br = max(sub, (target_step_bytes // bytes_per_prow) // sub * sub)
        # Keep grid >= 2 when possible (v7x megacore, pipeline overlap).
        br = min(br, max(sub, _round_up(_cdiv(n_packed, 2), sub)))
        n_packed_p = _round_up(n_packed, br)
        grid = n_packed_p // br
        rows_total = n_packed_p * k

        # Pack pred: [rows, C] -> [rows_total, c_pad] -> [n_packed_p, 128].
        pred_packed = jnp.pad(
            pred2, ((0, rows_total - rows), (0, c_pad - c))
        ).reshape(n_packed_p, k * c_pad)

        # Per original row: flat lane index of its label inside the packed row
        # (-1 for padded rows -> never matches). Expanded to one int32 per lane
        # wrapper-side so the kernel stays purely elementwise.
        lab_full = jnp.pad(lab, (0, rows_total - rows), constant_values=-1)
        sub_idx = jnp.arange(rows_total, dtype=jnp.int32) % k
        tgt = jnp.where(lab_full >= 0, lab_full + sub_idx * c_pad, -1)
        tgt = jnp.repeat(tgt.reshape(n_packed_p, k), c_pad, axis=1)   # (n_packed_p, 128)

        kernel = _packed_nll_kernel
        in_arrays = (pred_packed, tgt)
        in_specs = [pl.BlockSpec((br, 128), lambda i: (i, 0)),
                    pl.BlockSpec((br, 128), lambda i: (i, 0))]
        step_bytes = br * bytes_per_prow
    else:
        # ---- General path (C > 128): stream full rows. ----
        # TODO(synk): for vocab-scale C, add a class-chunk grid axis or a
        # label-indexed chunk gather instead of streaming all N*C elements.
        bytes_per_row = c_lanes * itemsize + 128 * 4   # (br,1) int32 pads to 128 lanes
        br = max(sub, (target_step_bytes // bytes_per_row) // sub * sub)
        br = min(br, max(sub, _round_up(_cdiv(rows, 2), sub)))
        rows_p = _round_up(rows, br)
        grid = rows_p // br

        pred_p = jnp.pad(pred2, ((0, rows_p - rows), (0, 0)))
        lab_p = jnp.pad(lab, (0, rows_p - rows), constant_values=-1).reshape(rows_p, 1)

        kernel = _general_nll_kernel
        in_arrays = (pred_p, lab_p)
        in_specs = [pl.BlockSpec((br, c), lambda i: (i, 0)),
                    pl.BlockSpec((br, 1), lambda i: (i, 0))]
        step_bytes = br * bytes_per_row

    # Double-buffered inputs + slack; capped well under v7x's 64 MiB VMEM.
    vmem_limit = int(min(48 * 1024 * 1024,
                         max(16 * 1024 * 1024, 2 * step_bytes + 4 * 1024 * 1024)))

    partials = pl.pallas_call(
        kernel,
        out_shape=jax.ShapeDtypeStruct((1, grid * 128), jnp.float32),
        grid_spec=pltpu.PrefetchScalarGridSpec(
            num_scalar_prefetch=0,
            grid=(grid,),
            in_specs=in_specs,
            out_specs=pl.BlockSpec((1, 128), lambda i: (0, i)),
        ),
        compiler_params=pltpu.CompilerParams(
            dimension_semantics=("parallel",),
            vmem_limit_bytes=vmem_limit,
        ),
    )(*in_arrays)

    # Each grid step wrote its raw partial sum broadcast over 128 lanes; take
    # lane 0 per block, sum, and apply -1/N (python-float immediate).
    total = jnp.sum(partials.reshape(grid, 128)[:, 0])
    return (scale * total).astype(pred.dtype)


if __name__ == "__main__":
    key = jax.random.PRNGKey(0)
    k1, k2, k3, k4, k5, k6 = jax.random.split(key, 6)

    # 1) The module's actual shape: batch=64, classes=10 (tiny-input fast path).
    n, c = 64, 10
    pred = jax.nn.log_softmax(jax.random.normal(k1, (n, c), jnp.float32), axis=-1)
    label = jax.random.randint(k2, (n,), 0, c, dtype=jnp.int32)
    loss = jax.block_until_ready(nll_loss(pred, label))
    ref = -jnp.mean(jnp.take_along_axis(pred, label[:, None], axis=1))
    assert jnp.allclose(loss, ref, atol=1e-4, rtol=1e-5), (float(loss), float(ref))

    # 2) Same small shape, forced through the packed Pallas path.
    loss_p = jax.block_until_ready(nll_loss(pred, label, force_pallas=True))
    assert jnp.allclose(loss_p, ref, atol=1e-4, rtol=1e-5), (float(loss_p), float(ref))

    # 3) Larger batch exercising the packed small-C path with grid >= 2.
    n2, c2 = 8192, 10
    pred2 = jax.nn.log_softmax(jax.random.normal(k3, (n2, c2), jnp.float32), axis=-1)
    label2 = jax.random.randint(k4, (n2,), 0, c2, dtype=jnp.int32)
    loss2 = jax.block_until_ready(nll_loss(pred2, label2))
    ref2 = -jnp.mean(jnp.take_along_axis(pred2, label2[:, None], axis=1))
    assert jnp.allclose(loss2, ref2, atol=1e-4, rtol=1e-5), (float(loss2), float(ref2))

    # 4) C > 128 exercising the general (un-packed) path.
    n3, c3 = 512, 200
    pred3 = jax.nn.log_softmax(jax.random.normal(k5, (n3, c3), jnp.float32), axis=-1)
    label3 = jax.random.randint(k6, (n3,), 0, c3, dtype=jnp.int32)
    loss3 = jax.block_until_ready(nll_loss(pred3, label3))
    ref3 = -jnp.mean(jnp.take_along_axis(pred3, label3[:, None], axis=1))
    assert jnp.allclose(loss3, ref3, atol=1e-4, rtol=1e-5), (float(loss3), float(ref3))

    print("KERNEL_OK")
</pallas_src>

<mosaic_0001>
module attributes {stable_mosaic.version = 11 : i64} {
  func.func @_packed_nll_kernel(%arg0: i32, %arg1: memref<8x128xf32, #tpu.memory_space<vmem>>, %arg2: memref<8x128xi32, #tpu.memory_space<vmem>>, %arg3: memref<1x128xf32, #tpu.memory_space<vmem>>) attributes {dimension_semantics = [#tpu.dimension_semantics<parallel>], iteration_bounds = array<i64: 1>, scalar_prefetch = 0 : i64, scratch_operands = 0 : i64, tpu.core_type = #tpu.core_type<tc>, window_params = [{transform_indices = @transform_0, window_bounds = array<i64: 8, 128>}, {transform_indices = @transform_1, window_bounds = array<i64: 8, 128>}, {transform_indices = @transform_2, window_bounds = array<i64: 1, 128>}]} {
    %c0 = arith.constant 0 : index
    %c0_0 = arith.constant 0 : index
    %0 = vector.load %arg1[%c0, %c0_0] : memref<8x128xf32, #tpu.memory_space<vmem>>, vector<8x128xf32>
    %c0_1 = arith.constant 0 : index
    %c0_2 = arith.constant 0 : index
    %1 = vector.load %arg2[%c0_1, %c0_2] : memref<8x128xi32, #tpu.memory_space<vmem>>, vector<8x128xi32>
    %2 = tpu.iota {dimensions = array<i32: 1>} : vector<8x128xi32>
    %3 = arith.cmpi eq, %2, %1 : vector<8x128xi32>
    %cst = arith.constant 0.000000e+00 : f32
    %4 = vector.broadcast %cst : f32 to vector<8x128xf32>
    %5 = arith.select %3, %0, %4 : vector<8x128xi1>, vector<8x128xf32>
    %cst_3 = arith.constant dense<0.000000e+00> : vector<8xf32>
    %6 = vector.multi_reduction <add>, %5, %cst_3 [1] : vector<8x128xf32> to vector<8xf32>
    %7 = vector.shape_cast %6 : vector<8xf32> to vector<8x1xf32>
    %cst_4 = arith.constant dense<0.000000e+00> : vector<1xf32>
    %8 = vector.multi_reduction <add>, %7, %cst_4 [0] : vector<8x1xf32> to vector<1xf32>
    %9 = vector.shape_cast %8 : vector<1xf32> to vector<1x1xf32>
    %10 = vector.shape_cast %9 : vector<1x1xf32> to vector<1x1xf32>
    %11 = vector.broadcast %10 : vector<1x1xf32> to vector<1x128xf32>
    %c0_5 = arith.constant 0 : index
    %c0_6 = arith.constant 0 : index
    %12 = vector.load %arg3[%c0_5, %c0_6] : memref<1x128xf32, #tpu.memory_space<vmem>>, vector<1x128xf32>
    tpu.vector_store %arg3[%c0_5, %c0_6], %11 {strides = array<i32>} : memref<1x128xf32, #tpu.memory_space<vmem>>, vector<1x128xf32>,
    return
  }
  func.func @transform_0(%arg0: i32) -> (i32, i32) {
    %c0_i32 = arith.constant 0 : i32
    %c0_i32_0 = arith.constant 0 : i32
    return %arg0, %c0_i32 : i32, i32
  }
  func.func @transform_1(%arg0: i32) -> (i32, i32) {
    %c0_i32 = arith.constant 0 : i32
    %c0_i32_0 = arith.constant 0 : i32
    return %arg0, %c0_i32 : i32, i32
  }
  func.func @transform_2(%arg0: i32) -> (i32, i32) {
    %c0_i32 = arith.constant 0 : i32
    %c0_i32_0 = arith.constant 0 : i32
    return %c0_i32, %arg0 : i32, i32
  }
}

</mosaic_0001>

<bundles_post_ra>
// kernel: tpu_custom_call.1
= control target key start
LH: loop header
LB: loop body
LE: loop exit
PB: predicated region body
PF: predicated region fallthrough
CT: control target
= control target key end

     0   :  { %7 = vsyncpa [#allocation3], 0  ;;  %s163_s0 = inlined_call_operand.hbm [shape: f32[8,128], index: 0, kind: input, shape index: {}]   ;;  %s164_s1 = inlined_call_operand.hbm [shape: s32[8,128], index: 1, kind: input, shape index: {}]   ;;  %s165_s2 = inlined_call_operand.hbm [shape: f32[1,128], index: 2, kind: output, shape index: {}]  }
   0x1   :  { %8 = vsyncpa [#allocation6], 0 }
   0x2   :  { %9 = vsyncpa [#allocation4], 0  ;;  %s136_s9 = smov [#allocation2]   ;;  %s137_s11 = smov [#allocation5]  }
   0x3   :  { %s16_s10 = sshll.u32 %s136_s9, 4  ;;  %s26_s12 = sshll.u32 %s137_s11, 4  ;;  %s17_s10 = int_to_ptr.vmem [resolvable:$true] %s16_s10  ;;  %s27_s12 = int_to_ptr.vmem [resolvable:$true] %s26_s12 }
   0x4   :  { %s78_s13 = scalar_lea.vmem %s17_s10, 128  ;;  %p83_p1 = scmp.lt.s32.totalorder %s17_s10, %s17_s10 }
   0x5   :  { %p79_p0 = scmp.ne.s32.totalorder %s17_s10, %s78_s13  ;;  %p84_p2 = scmp.lt.s32.totalorder %s78_s13, %s78_s13 }
   0x7   :  { %p85_p3 = por %p84_p2, %p83_p1 }
   0x9   :  { %p86_p4 = pnand %p85_p3, %p79_p0 }
   0xb   :  { %89 = shalt.err (!%p86_p4)
}
   0xc   :  { %19 = dma.hbm_to_vmem [thread:$0]  %s163_s0, 128, %s17_s10, [#allocation3]  }
   0xd   :  { %s98_s16 = scalar_lea.vmem %s27_s12, 128  ;;  %p103_p6 = scmp.lt.s32.totalorder %s27_s12, %s27_s12 }
   0xe   :  { %p99_p5 = scmp.ne.s32.totalorder %s27_s12, %s98_s16  ;;  %p104_p7 = scmp.lt.s32.totalorder %s98_s16, %s98_s16 }
  0x10   :  { %p105_p8 = por %p104_p7, %p103_p6 }
  0x12   :  { %p106_p9 = pnand %p105_p8, %p99_p5 }
  0x14   :  { %109 = shalt.err (!%p106_p9)
}
  0x15   :  { %29 = dma.hbm_to_vmem [thread:$0]  %s164_s1, 128, %s27_s12, [#allocation6]  }
  0x16   :  { %130 = dma.done.wait [#allocation3], 128  }
  0x17   :  { %131 = vsyncadd [#allocation3], 4294967168 }
  0x18   :  { %132 = dma.done.wait [#allocation6], 128  }
  0x19   :  { %133 = vsyncadd [#allocation6], 4294967168  ;;  %v38_v0 = vlaneseq  ;;  %v36_v2 = vld [vmem:[#allocation2] sm:$0xff]  ;;  %v37_v3 = vld [vmem:[#allocation5] sm:$0xff]  ;;  %s138_s0 = smov [#allocation7]  }
  0x1a   :  { %s57_s19 = sshll.u32 %s138_s0, 4  ;;  %s58_s19 = int_to_ptr.vmem [resolvable:$true] %s57_s19 }
  0x1b   :  { %v39_v1 = vand.u32 127, %v38_v0  ;;  %s110_s1 = scalar_lea.vmem %s58_s19, 16  ;;  %s114_s20 = scalar_lea.vmem %s58_s19, 32 }
  0x1c   :  { %p111_p10 = scmp.ne.s32.totalorder %s58_s19, %s110_s1  ;;  %p115_p11 = scmp.lt.s32.totalorder %s58_s19, %s58_s19 }
  0x1d   :  { %vm40_vm0 = vcmp.eq.s32.totalorder %v39_v1, %v37_v3  ;;  %p116_p12 = scmp.lt.s32.totalorder %s114_s20, %s110_s1 }
  0x1e   :  { %v41_v4 = vsel %vm40_vm0, %v36_v2, 0.0 }
  0x1f   :  { %42 = vadd.xlane.f32.xlu0 %v41_v4  ;;  %p117_p13 = por %p116_p12, %p115_p11 }
  0x21   :  { %p118_p0 = pnand %p117_p13, %p111_p10 }
  0xa8   :  { %v43_v5 = vpop.xlane.xlu0 %42 }
  0xa9   :  { %v44_v6 = vrot.slane %v43_v5, 4 }
  0xab   :  { %v45_v7 = vadd.f32 %v44_v6, %v43_v5 }
  0xad   :  { %v46_v8 = vrot.slane %v45_v7, 2 }
  0xaf   :  { %v47_v9 = vadd.f32 %v46_v8, %v45_v7 }
  0xb1   :  { %v48_v10 = vrot.slane %v47_v9, 1 }
  0xb3   :  { %v49_v11 = vadd.f32 %v48_v10, %v47_v9 }
  0xb5   :  { %50 = vst [vmem:[#allocation7] sm:$0x1] %v49_v11 }
  0xb6   :  { %121 = shalt.err (!%p118_p0)
}
  0xb7   :  { %60 = dma.vmem_to_hbm [thread:$0]  %s58_s19, 16, %s165_s2, [#allocation4]  }
  0xb8   :  { %134 = dma.done.wait [#allocation4], 16  }
  0xb9   :  { %135 = vsyncadd [#allocation4], 4294967280 }
  0xba   :  { %64 = vsyncpa [#allocation3], 1 }
  0xbb   :  { %65 = vsyncpa [#allocation6], 1 }
  0xbc   :  { %66 = vsyncpa [#allocation4], 1 }

</bundles_post_ra>
